<compile_context>
chip_gen: v6e
topology: v6e:2x2x1
jax: 0.10.0
libtpu: 0.0.40
codegen_flags: <defaults>
</compile_context>

<pallas_src>
import functools

import jax
import jax.numpy as jnp
from jax.experimental import pallas as pl
from jax.experimental.pallas import tpu as pltpu


def _pe_tile_kernel(inv_freq_ref, cos_d_ref, sin_d_ref, o_ref, *, block_rows: int):
    """Fill one (block_rows, E) tile of the positional-encoding table.

    With k = row0 + d and per-column frequency f:
      even col: sin(k f) = sin(row0 f) * cos(d f) + cos(row0 f) * sin(d f)
      odd  col: cos(k f) = cos(row0 f) * cos(d f) - sin(row0 f) * sin(d f)
    cos(d f) / sin(d f) are tile-invariant resident tables; only the (1, E) anchor row needs
    sin/cos each grid step, so per-element work is two multiplies and an add on the VPU.
    """
    row0 = (pl.program_id(0) * block_rows).astype(jnp.float32)
    theta0 = row0 * inv_freq_ref[...]                       # (1, E)
    s0 = jnp.sin(theta0)
    c0 = jnp.cos(theta0)

    col = jax.lax.broadcasted_iota(jnp.int32, theta0.shape, 1)
    odd = (col % 2) == 1
    a = jnp.where(odd, c0, s0)                              # (1, E)
    b = jnp.where(odd, -s0, c0)                             # (1, E)

    o_ref[...] = a * cos_d_ref[...] + b * sin_d_ref[...]    # (block_rows, E)


def _choose_row_tile(rows: int, embedding_size: int) -> int:
    """Row tile: multiple of 8, <= ~2 MiB f32 per output block, and an even grid (>= 2 steps)
    when there is enough work so v7x's two TensorCores split the 'parallel' axis evenly."""
    if rows < 16:
        return rows  # single block == full array dims (always a legal block shape)
    budget = 2 * 1024 * 1024                                # bytes per f32 output block
    cap = max(8, (budget // (4 * embedding_size)) // 8 * 8)
    n_tiles = max(2, pl.cdiv(rows, cap))
    if n_tiles % 2:
        n_tiles += 1                                        # even split for 2-core balance
    tile = ((pl.cdiv(rows, n_tiles) + 7) // 8) * 8
    return min(tile, rows)


@functools.lru_cache(maxsize=None)
def _pos_embedding_table(max_seq_len: int, embedding_size: int, n: float):
    """Build the full (max_seq_len, E) table with the Pallas kernel (cached, built once)."""
    assert embedding_size % 2 == 0, "embedding_size must be even"
    rows, e = max_seq_len, embedding_size

    tile = _choose_row_tile(rows, e)
    grid = (pl.cdiv(rows, tile),)

    # Column-dependent quantities, hoisted out of the kernel.  Denominators are computed with
    # the exact same expression as the PyTorch __init__ / reference.
    half = jnp.arange(e // 2, dtype=jnp.float32)
    denom = jnp.float32(n) ** (2.0 * half / jnp.float32(e))     # (E/2,)
    denom_full = jnp.repeat(denom, 2)                            # (E,) duplicated per sin/cos pair
    inv_freq = (1.0 / denom_full)[None, :]                       # (1, E)

    # Tile-invariant delta tables cos(d f), sin(d f), d in [0, tile).
    d = jnp.arange(tile, dtype=jnp.float32)[:, None]
    ang = d / denom_full[None, :]
    cos_d = jnp.cos(ang)
    sin_d = jnp.sin(ang)

    kernel = functools.partial(_pe_tile_kernel, block_rows=tile)

    return pl.pallas_call(
        kernel,
        out_shape=jax.ShapeDtypeStruct((rows, e), jnp.float32),
        grid=grid,
        in_specs=[
            pl.BlockSpec((1, e), lambda i: (0, 0)),       # inv_freq, resident in VMEM
            pl.BlockSpec((tile, e), lambda i: (0, 0)),    # cos_d,    resident in VMEM
            pl.BlockSpec((tile, e), lambda i: (0, 0)),    # sin_d,    resident in VMEM
        ],
        out_specs=pl.BlockSpec((tile, e), lambda i: (i, 0)),
        compiler_params=pltpu.CompilerParams(
            dimension_semantics=("parallel",),
            vmem_limit_bytes=32 * 1024 * 1024,
        ),
    )(inv_freq, cos_d, sin_d)


def positional_encoding_forward(x, max_seq_len: int, embedding_size: int, n: float = 10000.0):
    """Equivalent of PositionalEncoding(max_seq_len, embedding_size, n).forward(x).

    The table is input independent, so (like the PyTorch __init__) it is built once per
    (max_seq_len, embedding_size, n) by the Pallas kernel and cached; forward is just a slice.
    """
    seq_len = x.shape[1]
    assert seq_len <= max_seq_len, "seq_len must not exceed max_seq_len"
    table = _pos_embedding_table(int(max_seq_len), int(embedding_size), float(n))
    return table[:seq_len, :]


def _reference(seq_len: int, embedding_size: int, n: float = 10000.0):
    # Pure-JAX reference mirroring the PyTorch __init__ + slice.
    half = jnp.arange(embedding_size // 2, dtype=jnp.float32)
    k = jnp.arange(seq_len, dtype=jnp.float32)[:, None]
    denom = jnp.float32(n) ** (2.0 * half / jnp.float32(embedding_size))
    pe = jnp.zeros((seq_len, embedding_size), dtype=jnp.float32)
    pe = pe.at[:, 0::2].set(jnp.sin(k / denom))
    pe = pe.at[:, 1::2].set(jnp.cos(k / denom))
    return pe


if __name__ == "__main__":
    key = jax.random.PRNGKey(0)

    # Small shapes consistent with the module: batch=2, seq=8, hidden=32.
    max_seq_len, embedding_size = 16, 32
    batch, seq = 2, 8
    x = jax.random.normal(key, (batch, seq, embedding_size), dtype=jnp.float32)

    out = positional_encoding_forward(x, max_seq_len, embedding_size)
    out = jax.block_until_ready(out)
    ref = _reference(seq, embedding_size)
    assert out.shape == (seq, embedding_size), out.shape
    assert out.dtype == jnp.float32
    assert jnp.allclose(out, ref, atol=1e-5, rtol=1e-5), "mismatch vs reference (small)"

    # Multi-tile path with a longer sequence.  f32 trig at angles O(seq_len) carries an
    # inherent ~seq_len*eps argument-rounding error in BOTH the kernel's angle-addition
    # decomposition and the direct-formula reference (they are equally valid f32 roundings of
    # the true table), so the tolerance scales with the maximum angle magnitude.  Any real
    # tiling/indexing/parity bug produces O(1) errors, far above this tolerance.
    max_seq_len2, seq2, e2 = 1040, 1030, 128
    x2 = jax.random.normal(key, (1, seq2, e2), dtype=jnp.float32)
    out2 = jax.block_until_ready(positional_encoding_forward(x2, max_seq_len2, e2))
    ref2 = _reference(seq2, e2)
    atol2 = 1e-5 + 2e-6 * max_seq_len2
    assert out2.shape == (seq2, e2), out2.shape
    assert jnp.allclose(out2, ref2, atol=atol2, rtol=0.0), "mismatch vs reference (tiled)"

    # Forward is a cached-table slice: a second call returns identical values without rebuilding.
    out_again = jax.block_until_ready(positional_encoding_forward(x, max_seq_len, embedding_size))
    assert jnp.array_equal(out_again, out)

    print("KERNEL_OK")
</pallas_src>

<mosaic_0001>
module attributes {stable_mosaic.version = 11 : i64} {
  func.func @_pe_tile_kernel(%arg0: i32, %arg1: memref<1x32xf32, #tpu.memory_space<vmem>>, %arg2: memref<8x32xf32, #tpu.memory_space<vmem>>, %arg3: memref<8x32xf32, #tpu.memory_space<vmem>>, %arg4: memref<8x32xf32, #tpu.memory_space<vmem>>) attributes {dimension_semantics = [#tpu.dimension_semantics<parallel>], iteration_bounds = array<i64: 2>, scalar_prefetch = 0 : i64, scratch_operands = 0 : i64, tpu.core_type = #tpu.core_type<tc>, window_params = [{pipeline_mode = #tpu.pipeline_mode<synchronous>, transform_indices = @transform_0, window_bounds = array<i64: 1, 32>}, {pipeline_mode = #tpu.pipeline_mode<synchronous>, transform_indices = @transform_1, window_bounds = array<i64: 8, 32>}, {pipeline_mode = #tpu.pipeline_mode<synchronous>, transform_indices = @transform_2, window_bounds = array<i64: 8, 32>}, {transform_indices = @transform_3, window_bounds = array<i64: 8, 32>}]} {
    %c8_i32 = arith.constant 8 : i32
    %0 = arith.muli %arg0, %c8_i32 : i32
    %1 = arith.sitofp %0 : i32 to f32
    %c0 = arith.constant 0 : index
    %c0_0 = arith.constant 0 : index
    %2 = vector.load %arg1[%c0, %c0_0] : memref<1x32xf32, #tpu.memory_space<vmem>>, vector<1x32xf32>
    %3 = vector.broadcast %1 : f32 to vector<1x32xf32>
    %4 = arith.mulf %3, %2 : vector<1x32xf32>
    %5 = math.sin %4 : vector<1x32xf32>
    %6 = math.cos %4 : vector<1x32xf32>
    %7 = tpu.iota {dimensions = array<i32: 1>} : vector<1x32xi32>
    %c2_i32 = arith.constant 2 : i32
    %c0_i32 = arith.constant 0 : i32
    %8 = arith.cmpi eq, %c2_i32, %c0_i32 : i32
    %c1_i32 = arith.constant 1 : i32
    %9 = arith.select %8, %c1_i32, %c2_i32 : i32
    %10 = vector.broadcast %9 : i32 to vector<1x32xi32>
    %11 = arith.remsi %7, %10 : vector<1x32xi32>
    %c0_i32_1 = arith.constant 0 : i32
    %12 = vector.broadcast %c0_i32_1 : i32 to vector<1x32xi32>
    %13 = arith.cmpi ne, %11, %12 : vector<1x32xi32>
    %c0_i32_2 = arith.constant 0 : i32
    %14 = vector.broadcast %c0_i32_2 : i32 to vector<1x32xi32>
    %15 = arith.cmpi slt, %11, %14 : vector<1x32xi32>
    %c0_i32_3 = arith.constant 0 : i32
    %16 = arith.cmpi slt, %9, %c0_i32_3 : i32
    %17 = vector.broadcast %16 : i1 to vector<1x32xi1>
    %18 = vector.broadcast %17 : vector<1x32xi1> to vector<1x32xi1>
    %19 = arith.xori %15, %18 : vector<1x32xi1>
    %20 = arith.andi %19, %13 : vector<1x32xi1>
    %21 = vector.broadcast %9 : i32 to vector<1x32xi32>
    %22 = arith.addi %11, %21 : vector<1x32xi32>
    %23 = arith.select %20, %22, %11 : vector<1x32xi1>, vector<1x32xi32>
    %c1_i32_4 = arith.constant 1 : i32
    %24 = vector.broadcast %c1_i32_4 : i32 to vector<1x32xi32>
    %25 = arith.cmpi eq, %23, %24 : vector<1x32xi32>
    %26 = arith.select %25, %6, %5 : vector<1x32xi1>, vector<1x32xf32>
    %cst = arith.constant 0.000000e+00 : f32
    %27 = vector.broadcast %cst : f32 to vector<1x32xf32>
    %28 = arith.subf %27, %5 : vector<1x32xf32>
    %29 = arith.select %25, %28, %6 : vector<1x32xi1>, vector<1x32xf32>
    %c0_5 = arith.constant 0 : index
    %c0_6 = arith.constant 0 : index
    %30 = vector.load %arg2[%c0_5, %c0_6] : memref<8x32xf32, #tpu.memory_space<vmem>>, vector<8x32xf32>
    %31 = vector.broadcast %26 : vector<1x32xf32> to vector<8x32xf32>
    %32 = arith.mulf %31, %30 : vector<8x32xf32>
    %c0_7 = arith.constant 0 : index
    %c0_8 = arith.constant 0 : index
    %33 = vector.load %arg3[%c0_7, %c0_8] : memref<8x32xf32, #tpu.memory_space<vmem>>, vector<8x32xf32>
    %34 = vector.broadcast %29 : vector<1x32xf32> to vector<8x32xf32>
    %35 = arith.mulf %34, %33 : vector<8x32xf32>
    %36 = arith.addf %32, %35 : vector<8x32xf32>
    %c0_9 = arith.constant 0 : index
    %c0_10 = arith.constant 0 : index
    %37 = vector.load %arg4[%c0_9, %c0_10] : memref<8x32xf32, #tpu.memory_space<vmem>>, vector<8x32xf32>
    tpu.vector_store %arg4[%c0_9, %c0_10], %36 {strides = array<i32>} : memref<8x32xf32, #tpu.memory_space<vmem>>, vector<8x32xf32>,
    return
  }
  func.func @transform_0(%arg0: i32) -> (i32, i32) {
    %c0_i32 = arith.constant 0 : i32
    %c0_i32_0 = arith.constant 0 : i32
    %c0_i32_1 = arith.constant 0 : i32
    return %c0_i32, %c0_i32_0 : i32, i32
  }
  func.func @transform_1(%arg0: i32) -> (i32, i32) {
    %c0_i32 = arith.constant 0 : i32
    %c0_i32_0 = arith.constant 0 : i32
    %c0_i32_1 = arith.constant 0 : i32
    return %c0_i32, %c0_i32_0 : i32, i32
  }
  func.func @transform_2(%arg0: i32) -> (i32, i32) {
    %c0_i32 = arith.constant 0 : i32
    %c0_i32_0 = arith.constant 0 : i32
    %c0_i32_1 = arith.constant 0 : i32
    return %c0_i32, %c0_i32_0 : i32, i32
  }
  func.func @transform_3(%arg0: i32) -> (i32, i32) {
    %c0_i32 = arith.constant 0 : i32
    %c0_i32_0 = arith.constant 0 : i32
    return %arg0, %c0_i32 : i32, i32
  }
}

</mosaic_0001>

<bundles_post_ra>
// kernel: tpu_custom_call.1
= control target key start
LH: loop header
LB: loop body
LE: loop exit
PB: predicated region body
PF: predicated region fallthrough
CT: control target
= control target key end

     0   :  { %8 = vsyncpa [#allocation3], 0  ;;  %s973_s0 = inlined_call_operand.hbm [shape: f32[1,32], index: 0, kind: input, shape index: {}]   ;;  %s974_s1 = inlined_call_operand.hbm [shape: f32[8,32], index: 1, kind: input, shape index: {}]   ;;  %s975_s2 = inlined_call_operand.hbm [shape: f32[8,32], index: 2, kind: input, shape index: {}]   ;;  %s976_s3 = inlined_call_operand.hbm [shape: f32[16,32], index: 3, kind: output, shape index: {}]  }
   0x1   :  { %9 = vsyncpa [#allocation6], 0 }
   0x2   :  { %10 = vsyncpa [#allocation4], 0 }
   0x3   :  { %12 = vsyncpa [#allocation4 + $0x1], 0  ;;  %s809_s12 = smov 0   ;;  %s811_s13 = smov 0  }
   0x4   :  { %s813_s14 = smov 0   ;;  %s815_s15 = smov 0  }
   0x5 LB: > { %s830_s16 = sadd.s32 4294967295, %s777_s15   ;;  %s524_s17 = sadd.s32 4294967294, %s777_s15   ;;  %s777_s15 = sphi %s815_s15, %s992_s15   ;;  %s773_s14 = sphi %s813_s14, %s991_s14   ;;  %s769_s13 = sphi %s811_s13, %s990_s13   ;;  %s765_s12 = sphi %s809_s12, %s989_s12  }
   0x6   : > { %s834_s18 = sadd.s32 1, %s777_s15   ;;  %s88_s19 = sadd.s32 1, %s773_s14 }
   0x7   : > { %s85_s20 = ssub.s32 %s777_s15, %s834_s18  ;;  %p98_p0 = scmp.ne.s32.totalorder %s773_s14, %s769_s13 }
   0x8   : > { %p86_p1 = scmp.eq.s32.totalorder %s85_s20, 0  ;;  %p99_p2 = scmp.eq.s32.totalorder %s830_s16, 1 }
   0x9   : > { %p104_p3 = scmp.ne.s32.totalorder %s769_s13, %s765_s12  ;;  %p105_p4 = scmp.eq.s32.totalorder %s524_s17, 1 }
   0xa   : > { %s845_s21 = scalar_select %p86_p1, %s773_s14, %s88_s19  }
   0xb   : > { %p847_p5 = por %p99_p2, %p98_p0  ;;  %p851_p6 = por %p105_p4, %p104_p3 }
   0xc   : > { %p525_p7 = scmp.ge.s32.totalorder %s777_s15, 1  ;;  %p112_p8 = scmp.lt.s32.totalorder %s777_s15, 3 }
   0xd   : > { %s979_s22 = scalar_select %p847_p5, 1, 0 }
   0xe   : > { %s980_s23 = scalar_select %p851_p6, 1, 0 }
   0xf   : > { %p977_p9 = scmp.eq.s32.totalorder %s830_s16, 0  ;;  %p858_p10 = pnand %p525_p7, %p112_p8 }
  0x10   : > { %s779_s25 = smov [#allocation5]   ;;  %s780_s27 = smov [#allocation2]  }
  0x11   : > { %s136_s26 = sshll.u32 %s779_s25, 4  ;;  %p565_p11 = pneg %p858_p10  ;;  %s137_s26 = int_to_ptr.vmem [resolvable:$true] %s136_s26 }
  0x12   : > { %s125_s28 = sshll.u32 %s780_s27, 4  ;;  %s781_s30 = smov [#allocation7]   ;;  %s126_s28 = int_to_ptr.vmem [resolvable:$true] %s125_s28 }
  0x13   : > { %p866_p12 = pnand %p977_p9, %p565_p11  ;;  %s147_s4 = sshll.u32 %s781_s30, 4  ;;  %s870_s4 = int_to_ptr.vmem [resolvable:$true] %s147_s4 }
  0x14   : > { %s642_s5 = scalar_lea.vmem %s137_s26, 128  ;;  %p650_p3 = scmp.lt.s32.totalorder %s137_s26, %s137_s26 }
  0x15   : > { %p633_p13 = pneg %p866_p12  ;;  %p643_p0 = scmp.ne.s32.totalorder %s137_s26, %s642_s5 }
  0x16   : > { %p651_p4 = scmp.lt.s32.totalorder %s642_s5, %s642_s5 }
  0x17   : > { %p645_p1 = pnand %p643_p0, %p633_p13 }
  0x18   : > { %p652_p7 = por %p651_p4, %p650_p3 }
  0x19   : > { %p646_p2 = pneg %p645_p1 }
  0x1b   : > { %p653_p8 = pnand %p652_p7, %p646_p2 }
  0x1d   : > { %656 = shalt.err (!%p653_p8)
}
  0x1e   : > { %571 = dma.hbm_to_vmem [thread:$0]  (!%p866_p12), %s974_s1, 128, %s137_s26, [#allocation6]  }
  0x1f   : > { %s668_s8 = scalar_lea.vmem %s126_s28, 16  ;;  %s675_s9 = scalar_lea.vmem %s126_s28, 32 }
  0x20   : > { %p669_p11 = scmp.ne.s32.totalorder %s126_s28, %s668_s8  ;;  %p676_p0 = scmp.lt.s32.totalorder %s126_s28, %s126_s28 }
  0x21   : > { %p677_p1 = scmp.lt.s32.totalorder %s675_s9, %s668_s8 }
  0x22   : > { %p671_p9 = pnand %p669_p11, %p633_p13 }
  0x23   : > { %p678_p5 = por %p677_p1, %p676_p0 }
  0x24   : > { %p672_p6 = pneg %p671_p9 }
  0x26   : > { %p679_p3 = pnand %p678_p5, %p672_p6 }
  0x28   : > { %682 = shalt.err (!%p679_p3)
}
  0x29   : > { %568 = dma.hbm_to_vmem [thread:$0]  (!%p866_p12), %s973_s0, 16, %s126_s28, [#allocation3]  }
  0x2a   : > { %s694_s17 = scalar_lea.vmem %s870_s4, 128  ;;  %p702_p7 = scmp.lt.s32.totalorder %s870_s4, %s870_s4 }
  0x2b   : > { %p695_p2 = scmp.ne.s32.totalorder %s870_s4, %s694_s17  ;;  %p703_p5 = scmp.lt.s32.totalorder %s694_s17, %s694_s17 }
  0x2d   : > { %p697_p9 = pnand %p695_p2, %p633_p13  ;;  %p704_p6 = por %p703_p5, %p702_p7 }
  0x2f   : > { %p698_p4 = pneg %p697_p9 }
  0x31   : > { %p705_p8 = pnand %p704_p6, %p698_p4 }
  0x33   : > { %708 = shalt.err (!%p705_p8)
}
  0x34   : > { %574 = dma.hbm_to_vmem [thread:$0]  (!%p866_p12), %s975_s2, 128, %s870_s4, [#allocation6]  }
  0x35   : > { %160 = sbr.rel (%p858_p10) target bundleno = 173 (0xad), region = 32  ;;  %p983_p11 = scmp.eq.s32.totalorder (!%p858_p10), %s830_s16, 0 }
  0x3a   : > { %752 = dma.done.wait (%p983_p11), [#allocation3], 16   ;;  %p984_p13 = pmov %p983_p11 }
  0x3b   : > { %p985_p0 = pmov %p983_p11 }
  0x3c   : > { %754 = vsyncadd (%p984_p13), [#allocation3], 4294967280 }
  0x3d   : > { %756 = dma.done.wait (%p985_p0), [#allocation6], 256   ;;  %p986_p1 = pmov %p985_p0 }
  0x3e   : > { %s534_s25 = sshll.u32 %s830_s16, 3  ;;  %v189_v1 = vld [vmem:[#allocation2] sm:$0x1]  ;;  %v782_v14 = vmov 683565275   ;;  %s184_s24 = sand.u32 1, %s769_s13  }
  0x3f   : > { %758 = vsyncadd (%p986_p1), [#allocation6], 4294967040  ;;  %s188_s26 = scvt.s32.f32 %s534_s25  ;;  %v783_v16 = vmov 2475754826   ;;  %v784_v18 = vmov 2131351028  }
  0x40   : > { %v785_v20 = vmov 2102212464   ;;  %v786_v22 = vmov 920167782   ;;  %v787_v29 = vmov 1326507024  }
  0x41   : > { %v190_v0 = vstv %s188_s26  ;;  %s533_s27 = sshll.u32 %s184_s24, 3  ;;  %s544_s30 = sshll.u32 %s830_s16, 7 }
  0x42   : > { %v914_v2 = vmul.f32 %v190_v0, %v189_v1  ;;  %s186_s28 = scalar_lea.vmem [#allocation8], %s533_s27  ;;  %s444_s6 = scalar_lea.hbm %s976_s3, %s544_s30 }
  0x43   : > { %s446_s29 = sshll.u32 %s186_s28, 4  ;;  %s433_s7 = scalar_lea.sflag [#allocation4], %s184_s24  ;;  %s447_s29 = int_to_ptr.vmem [resolvable:$true] %s446_s29 }
  0x44   : > { %v195_v3 = vand.u32 2139095040, %v914_v2  ;;  %v192_v5 = vand.u32 2147483647, %v914_v2  ;;  %vm194_vm7 = vcmp.lt.s32.totalorder %v914_v2, 0  ;;  %vm284_vm15 = vweird.f32 %v914_v2  ;;  %s709_s8 = scalar_lea.vmem %s447_s29, 128  ;;  %p987_p12 = scmp.ne.s32.totalorder %s979_s22, 0 }
  0x45   : > { %p710_p10 = scmp.ne.s32.totalorder %s447_s29, %s709_s8  ;;  %s788_s9 = smov [#allocation8]  }
  0x46   : > { %v196_v4 = vshrl.u32 %v195_v3, 23  ;;  %v199_v8 = vand.u32 8388607, %v192_v5  ;;  %vm193_vm8 = vcmp.le.f32.partialorder %v192_v5, 0.7853982  ;;  %s713_s10 = sshll.u32 %s788_s9, 4  ;;  %s714_s10 = int_to_ptr.vmem [resolvable:$false] %s713_s10 }
  0x47   : > { %p711_p3 = pnand %p710_p10, %p987_p12  ;;  %s715_s16 = scalar_lea.vmem %s714_s10, 256 }
  0x48   : > { %v535_v6 = vadd.s32 4294967169, %v196_v4  ;;  %v200_v11 = vor.u32 8388608, %v199_v8  ;;  %p716_p9 = scmp.lt.s32.totalorder %s447_s29, %s714_s10  ;;  %p717_p4 = scmp.lt.s32.totalorder %s715_s16, %s709_s8 }
  0x49   : > { %p712_p2 = pneg %p711_p3 }
  0x4a   : > { %v202_v7 = vadd.s32 1, %v535_v6  ;;  %v240_v31 = vshll.u32 %v200_v11, 8  ;;  %p718_p7 = por %p717_p4, %p716_p9 }
  0x4c   : > { %vm203_vm0 = vcmp.gt.s32.totalorder %v202_v7, 0  ;;  %p719_p5 = pnand %p718_p7, %p712_p2 }
  0x4d   : > { %v204_v9 = vsel %vm203_vm0, %v202_v7, 0 }
  0x4e   : > { %v206_v10 = vand.u32 31, %v204_v9  ;;  %v205_v12 = vshrl.u32 %v204_v9, 5 }
  0x50   : > { %v207_v13 = vsub.s32 32, %v206_v10  ;;  %v209_v15 = vshll.u32 %v782_v14, %v206_v10  ;;  %v212_v17 = vshll.u32 %v783_v16, %v206_v10  ;;  %v215_v19 = vshll.u32 %v784_v18, %v206_v10 }
  0x51   : > { %v218_v21 = vshll.u32 %v785_v20, %v206_v10  ;;  %v221_v23 = vshll.u32 %v786_v22, %v206_v10  ;;  %vm224_vm1 = vcmp.lt.s32.totalorder %v205_v12, 1  ;;  %vm227_vm2 = vcmp.lt.s32.totalorder %v205_v12, 4 }
  0x52   : > { %v208_v24 = vshrl.u32 %v782_v14, %v207_v13  ;;  %v210_v25 = vshrl.u32 %v783_v16, %v207_v13  ;;  %v213_v26 = vshrl.u32 %v784_v18, %v207_v13  ;;  %v216_v27 = vshrl.u32 %v785_v20, %v207_v13 }
  0x53   : > { %v219_v28 = vshrl.u32 %v786_v22, %v207_v13  ;;  %v222_v30 = vshrl.u32 %v787_v29, %v207_v13  ;;  %vm225_vm3 = vcmp.lt.s32.totalorder %v205_v12, 2  ;;  %vm226_vm4 = vcmp.lt.s32.totalorder %v205_v12, 3 }
  0x54   : > { %v211_v32 = vor.u32 %v210_v25, %v209_v15  ;;  %v214_v33 = vor.u32 %v213_v26, %v212_v17  ;;  %v217_v34 = vor.u32 %v216_v27, %v215_v19 }
  0x55   : > { %v220_v35 = vor.u32 %v219_v28, %v218_v21  ;;  %v223_v36 = vor.u32 %v222_v30, %v221_v23  ;;  %v399_v23 = vlaneseq }
  0x56   : > { %v228_v37 = vsel %vm224_vm1, %v208_v24, %v211_v32  ;;  %v229_v38 = vsel %vm227_vm2, %v217_v34, 2102212464  ;;  %v232_v39 = vsel %vm224_vm1, %v211_v32, %v214_v33  ;;  %v236_v40 = vsel %vm224_vm1, %v214_v33, %v217_v34 }
  0x57   : > { %v230_v41 = vsel %vm226_vm4, %v214_v33, %v229_v38  ;;  %v233_v42 = vsel %vm227_vm2, %v220_v35, 920167782  ;;  %v237_v43 = vsel %vm227_vm2, %v223_v36, 1326507024  ;;  %v400_v26 = vand.u32 127, %v399_v23 }
  0x58   : > { %v234_v44 = vsel %vm226_vm4, %v217_v34, %v233_v42  ;;  %v238_v45 = vsel %vm226_vm4, %v220_v35, %v237_v43  ;;  %v231_v46 = vsel %vm225_vm3, %v228_v37, %v230_v41  ;;  %v419_v29 = vshrl.u32 %v399_v23, 7  ;;  %v417_v43 = vld [vmem:[#allocation5] sm:$0xff] }
  0x59   : > { %v235_v47 = vsel %vm225_vm3, %v232_v39, %v234_v44  ;;  %v239_v48 = vsel %vm225_vm3, %v236_v40, %v238_v45  ;;  %v247_v53 = vmul.u32 %v240_v31, %v231_v46  ;;  %v405_v28 = vand.u32 1, %v400_v26 }
  0x5a   : > { %v920_v49 = vmul.u32.u64.low %v240_v31, %v239_v48  ;;  %v921_v50 = vmul.u32.u64.high %v240_v31, %v239_v48, %v920_v49  ;;  %v923_v51 = vmul.u32.u64.low %v240_v31, %v235_v47  ;;  %v924_v52 = vmul.u32.u64.high %v240_v31, %v235_v47, %v923_v51 }
  0x5b   : > { %vm413_vm0 = vcmp.eq.s32.totalorder %v405_v28, 1  ;;  %v420_v36 = vsub.s32 0, %v419_v29  ;;  %vm430_vm1 = vcmask 261120  }
  0x5c   : > { %vm249_vm5 = vc.u32 %v921_v50, %v923_v51  ;;  %v250_v54 = vadd.s32 1, %v924_v52  ;;  %v248_v1 = vadd.s32 %v923_v51, %v921_v50 }
  0x5e   : > { %v251_v55 = vsel %vm249_vm5, %v250_v54, %v924_v52 }
  0x5f   : > { %v252_v56 = vadd.s32 %v251_v55, %v247_v53 }
  0x61   : > { %v253_v57 = vadd.s32 536870912, %v252_v56 }
  0x63   : > { %v254_v58 = vshrl.u32 %v253_v57, 30 }
  0x65   : > { %v255_v59 = vshll.u32 %v254_v58, 30  ;;  %v278_v16 = vsub.s32 4, %v254_v58 }
  0x67   : > { %v256_v60 = vsub.s32 %v252_v56, %v255_v59  ;;  %v279_v19 = vsel %vm194_vm7, %v278_v16, %v254_v58 }
  0x68   : > { %v281_v21 = vsel %vm193_vm8, 0, %v279_v19 }
  0x69   : > { %v258_v61 = vsub.s32 0, %v256_v60  ;;  %v285_v22 = vadd.s32 3, %v281_v21  ;;  %v389_v25 = vand.u32 3, %v281_v21 }
  0x6b   : > { %v536_v62 = vmin.u32 %v258_v61, %v256_v60  ;;  %v286_v24 = vand.u32 3, %v285_v22  ;;  %vm394_vm10 = vcmp.eq.s32.totalorder %v389_v25, 2  ;;  %vm391_vm12 = vcmp.eq.s32.totalorder %v389_v25, 0 }
  0x6c   : > { %vm390_vm14 = vcmp.lt.s32.totalorder %v389_v25, 2 }
  0x6d   : > { %v260_v63 = vclz %v536_v62  ;;  %vm291_vm9 = vcmp.eq.s32.totalorder %v286_v24, 2  ;;  %vm288_vm11 = vcmp.eq.s32.totalorder %v286_v24, 0  ;;  %vm287_vm13 = vcmp.lt.s32.totalorder %v286_v24, 2 }
  0x6f   : > { %v537_v0 = vadd.s32 4294967294, %v260_v63 }
  0x71   : > { %vm538_vm6 = vcmp.lt.s32.totalorder %v537_v0, 0 }
  0x72   : > { %v263_v3 = vsel %vm538_vm6, 0, %v537_v0 }
  0x73   : > { %v264_v4 = vsub.s32 32, %v263_v3  ;;  %v265_v6 = vshll.u32 %v256_v60, %v263_v3  ;;  %v268_v7 = vsub.s32 4294967266, %v263_v3 }
  0x75   : > { %v266_v8 = vshrl.u32 %v248_v1, %v264_v4  ;;  %v269_v9 = vadd.s32 127, %v268_v7 }
  0x77   : > { %v267_v10 = vor.u32 %v266_v8, %v265_v6  ;;  %v270_v11 = vshll.u32 %v269_v9, 23 }
  0x79   : > { %v271_v12 = vor.u32 4788187, %v270_v11  ;;  %v274_v13 = vcvt.s32.f32 %v267_v10 }
  0x7b   : > { %v272_v14 = vand.u32 2147483647, %v271_v12 }
  0x7d   : > { %v275_v15 = vmul.f32 %v274_v13, %v272_v14 }
  0x7f   : > { %v276_v17 = vxor.u32 2147483648, %v275_v15 }
  0x81   : > { %v277_v18 = vsel %vm194_vm7, %v276_v17, %v275_v15 }
  0x82   : > { %v280_v20 = vsel %vm193_vm8, %v914_v2, %v277_v18  ;;  %v423_v2 = vld [vmem:[#allocation7] sm:$0xff] }
  0x83   : > { %627 = vcosq.f32 %v280_v20 }
  0x84   : > { %629 = vsinq.f32 %v280_v20 }
  0x90   : > { %v628_v27 = vpop.eup %627 }
  0x91   : > { %v630_v5 = vpop.eup %629  ;;  %v292_v30 = vxor.u32 2147483648, %v628_v27 }
  0x92   : > { %v289_v31 = vxor.u32 2147483648, %v630_v5 }
  0x93   : > { %v293_v32 = vsel %vm291_vm9, %v292_v30, %v630_v5  ;;  %v396_v33 = vsel %vm394_vm10, %v292_v30, %v630_v5 }
  0x94   : > { %v290_v34 = vsel %vm288_vm11, %v628_v27, %v289_v31  ;;  %v393_v35 = vsel %vm391_vm12, %v628_v27, %v289_v31 }
  0x95   : > { %v294_v37 = vsel %vm287_vm13, %v290_v34, %v293_v32  ;;  %v397_v38 = vsel %vm390_vm14, %v393_v35, %v396_v33 }
  0x96   : > { %v295_v39 = vsel %vm284_vm15, nan, %v294_v37  ;;  %v398_v40 = vsel %vm284_vm15, nan, %v397_v38 }
  0x97   : > { %v414_v41 = vsel %vm413_vm0, %v398_v40, %v295_v39  ;;  %v415_v42 = vsub.f32 0.0, %v295_v39 }
  0x98   : > { %v421_v44 = vrot.slane %v414_v41, %v420_v36 }
  0x99   : > { %v416_v45 = vsel %vm413_vm0, %v415_v42, %v398_v40 }
  0x9a   : > { %v422_v46 = vmul.f32 %v421_v44, %v417_v43  ;;  %v427_v47 = vrot.slane %v416_v45, %v420_v36 }
  0x9c   : > { %v428_v48 = vmul.f32 %v427_v47, %v423_v2 }
  0x9e   : > { %v429_v49 = vadd.f32 %v428_v48, %v422_v46 }
  0xa0   : > { %431 = vst.msk [vmem:[%s186_s28] sm:$0xff] %vm430_vm1, %v429_v49 }
  0xa1   : > { %722 = shalt.err (!%p719_p5)
}
  0xa2   : > { %s723_s11 = scalar_lea.hbm %s444_s6, 128  ;;  %s727_s20 = scalar_lea.hbm %s976_s3, 256 }
  0xa3   : > { %p724_p6 = scmp.ne.s32.totalorder %s444_s6, %s723_s11  ;;  %p728_p13 = scmp.lt.s32.totalorder %s444_s6, %s976_s3 }
  0xa4   : > { %p729_p0 = scmp.lt.s32.totalorder %s727_s20, %s723_s11 }
  0xa5   : > { %p725_p8 = pnand %p724_p6, %p987_p12 }
  0xa6   : > { %p730_p1 = por %p729_p0, %p728_p13 }
  0xa7   : > { %p726_p11 = pneg %p725_p8 }
  0xa9   : > { %p731_p10 = pnand %p730_p1, %p726_p11 }
  0xab   : > { %734 = shalt.err (!%p731_p10)
}
  0xac   : > { %563 = dma.vmem_to_hbm [thread:$0]  (%p987_p12), %s447_s29, 128, %s444_s6, %s433_s7  }
  0xad PF: > { %p585_p3 = scmp.ge.s32.totalorder %s777_s15, 2  ;;  %s458_s24 = sand.u32 1, %s765_s12  }
  0xae   : > { %p988_p2 = scmp.ne.s32.totalorder %s980_s23, 0  ;;  %s459_s27 = scalar_lea.sflag [#allocation4], %s458_s24 }
  0xb0   : > { %p576_p9 = pnand %p585_p3, %p988_p2 }
  0xb2   : > { %p577_p4 = pneg %p576_p9 }
  0xb4   : > { %760 = dma.done.wait (%p577_p4), %s459_s27, 128  }
  0xb5   : > { %762 = vsyncadd (%p577_p4), %s459_s27, 4294967168  ;;  %p15_p7 = scmp.ge.s32.totalorder %s834_s18, 4   ;;  %s989_s12 = smov %s769_s13 }
  0xb6   : > { %s990_s13 = smov %s773_s14  ;;  %s991_s14 = smov %s845_s21 }
  0xb7   : > { %s992_s15 = smov %s834_s18  ;;  %17 = sbr.rel (!%p15_p7) target bundleno = 5 (0x5), region = 77 }
  0xbc   :  { %464 = vsyncpa [#allocation3], 1 }
  0xbd   :  { %466 = vsyncpa [#allocation3 + $0x1], 1 }
  0xbe   :  { %467 = vsyncpa [#allocation6], 1 }
  0xbf   :  { %468 = vsyncpa [#allocation4], 1 }
  0xc0   :  { %470 = vsyncpa [#allocation4 + $0x1], 1 }

</bundles_post_ra>
